<compile_context>
chip_gen: v5e
topology: v5e:2x2
jax: 0.10.0
libtpu: 0.0.40
codegen_flags: <defaults>
</compile_context>

<pallas_src>
import functools
import math

import jax
import jax.numpy as jnp
from jax.experimental import pallas as pl
from jax.experimental.pallas import tpu as pltpu

_BN_EPS = 1e-5


# ---------------------------------------------------------------------------
# Fused kernel: all layers in one body, activation resident in VMEM.
# ---------------------------------------------------------------------------
def _fused_cnn1d_kernel(x_ref, *refs, cfg, L, BT):
    """refs = (w0, scale0, shift0, ..., w5, scale5, shift5, o_ref).

    x_ref : (BT, L, 1)  f32 input block (channels-last, Cin=1)
    w_l   : (K*Cin, Cout) bf16 for all but the last layer;
            last layer: (1, 1, K*Cin) f32 (broadcast layout for VPU reduce)
    scale/shift_l : (1, Cout) f32 fused BN scale / (bias+BN) shift
    o_ref : (BT, 1, L) f32 lane-dense NCL output block
    """
    o_ref = refs[-1]
    prm = refs[:-1]
    n_layers = len(cfg)

    act = x_ref[...].astype(jnp.float32)  # (BT, L, 1)

    for l, (K, cin, cout, relu) in enumerate(cfg):  # static unroll over layers
        pad = (K - 1) // 2
        zpad = jnp.zeros((BT, pad, cin), jnp.float32)
        xp = jnp.concatenate([zpad, act, zpad], axis=1)            # (BT, L+K-1, cin)
        # im2col: fold the K taps into the contraction (lane) axis, built once.
        cols = jnp.concatenate(
            [xp[:, k:k + L, :] for k in range(K)], axis=2)         # (BT, L, K*cin)

        w_ref = prm[3 * l]
        scale = prm[3 * l + 1][...]                                # (1, cout) f32
        shift = prm[3 * l + 2][...]                                # (1, cout) f32

        if l < n_layers - 1:
            # Single MXU matmul per layer: (BT*L, K*cin) @ (K*cin, cout).
            y = jnp.dot(
                cols.reshape(BT * L, K * cin).astype(jnp.bfloat16),
                w_ref[...],
                preferred_element_type=jnp.float32,
            )                                                      # (BT*L, cout) f32
            y = y * scale + shift                                  # f32 epilogue
            if relu:
                y = jnp.maximum(y, 0.0)
            act = y.reshape(BT, L, cout)
        else:
            # Final layer (cout == 1): VPU multiply + lane reduction so the
            # result is lane-dense along L and already in NCL layout.
            wvec = w_ref[...]                                      # (1, 1, K*cin) f32
            y = jnp.sum(cols * wvec, axis=-1)                      # (BT, L)
            y = y * scale + shift                                  # (1,1) broadcasts
            o_ref[...] = y.reshape(BT, 1, L).astype(o_ref.dtype)


def _pick_batch_tile(B):
    """Largest batch tile (<= 8) dividing B that still leaves >= 2 grid steps
    (so both v7x TensorCores get work); fall back to a single step."""
    for bt in (8, 4, 2, 1):
        if B % bt == 0 and B // bt >= 2:
            return bt
    return min(B, 8)


def cnn1d_forward(x_ncl, params):
    """x_ncl: (B, 1, L) like PyTorch; returns (B, 1, L)."""
    B, cin0, L = x_ncl.shape
    assert cin0 == 1
    x = jnp.transpose(x_ncl, (0, 2, 1)).astype(jnp.float32)       # (B, L, 1)

    BT = _pick_batch_tile(B)
    grid = (B // BT,)
    cfg = tuple((p["K"], p["cin"], p["cout"], p["relu"]) for p in params)

    flat_inputs = [x]
    in_specs = [pl.BlockSpec((BT, L, 1), lambda b: (b, 0, 0))]
    for p in params:
        for name in ("w", "scale", "shift"):
            a = p[name]
            flat_inputs.append(a)
            in_specs.append(
                pl.BlockSpec(a.shape, lambda b, nd=a.ndim: (0,) * nd))

    kernel = functools.partial(_fused_cnn1d_kernel, cfg=cfg, L=L, BT=BT)
    return pl.pallas_call(
        kernel,
        out_shape=jax.ShapeDtypeStruct((B, 1, L), jnp.float32),
        grid_spec=pltpu.PrefetchScalarGridSpec(
            num_scalar_prefetch=0,
            grid=grid,
            in_specs=in_specs,
            out_specs=pl.BlockSpec((BT, 1, L), lambda b: (b, 0, 0)),
        ),
        compiler_params=pltpu.CompilerParams(
            dimension_semantics=("parallel",)),
    )(*flat_inputs)


# ---------------------------------------------------------------------------
# Parameter construction (deterministic, matching the PyTorch __init__ shapes)
# ---------------------------------------------------------------------------
def _xavier_uniform_conv1d(key, cin, cout, k):
    """Matches torch.nn.init.xavier_uniform_ on a Conv1d weight (Cout, Cin, K)."""
    fan_in = cin * k
    fan_out = cout * k
    bound = math.sqrt(6.0 / (fan_in + fan_out))
    return jax.random.uniform(key, (cout, cin, k), jnp.float32, -bound, bound)


def build_cnn1d_params(hidden_size=32, num_layers=3, seed=0):
    """Returns list of layer dicts: {'w','scale','shift','relu','K','cin','cout'}."""
    # (Cin, Cout, K, has_bn_relu) replicating the module with num_layers=3.
    cfg = [(1, hidden_size, 7, True)]                                # encoder[0]
    cfg += [(hidden_size, hidden_size, 5, True)] * (num_layers - 2)  # encoder[1:]
    cfg += [(hidden_size, 2 * hidden_size, 3, True)]                 # bottleneck
    cfg += [(2 * hidden_size, hidden_size, 3, True)]                 # decoder[0]
    cfg += [(hidden_size, hidden_size, 5, True)] * (num_layers - 2)  # decoder[1:]
    cfg += [(hidden_size, 1, 7, False)]                              # output_layer

    key = jax.random.PRNGKey(seed)
    params = []
    n = len(cfg)
    for idx, (cin, cout, k, has_bn) in enumerate(cfg):
        key, wkey = jax.random.split(key)
        w_oik = _xavier_uniform_conv1d(wkey, cin, cout, k)           # (cout, cin, k)
        # Tap-major flatten: row index = k_tap*cin + ci, matching the in-kernel
        # im2col concatenation order.
        w_flat = jnp.transpose(w_oik, (2, 1, 0)).reshape(k * cin, cout)
        conv_bias = jnp.zeros((cout,), jnp.float32)                  # constant_(bias, 0)
        if has_bn:
            gamma = jnp.ones((cout,), jnp.float32)
            beta = jnp.zeros((cout,), jnp.float32)
            run_mean = jnp.zeros((cout,), jnp.float32)
            run_var = jnp.ones((cout,), jnp.float32)
            bn_scale = gamma / jnp.sqrt(run_var + _BN_EPS)
            scale = bn_scale
            shift = (conv_bias - run_mean) * bn_scale + beta
        else:
            scale = jnp.ones((cout,), jnp.float32)
            shift = conv_bias

        if idx == n - 1:
            # Final Cout=1 layer: f32 weights in broadcast layout for the VPU path.
            w_store = w_flat.reshape(1, 1, k * cin).astype(jnp.float32)
        else:
            w_store = w_flat.astype(jnp.bfloat16)                    # MXU operand

        params.append(dict(
            w=w_store,
            scale=scale.reshape(1, cout).astype(jnp.float32),
            shift=shift.reshape(1, cout).astype(jnp.float32),
            relu=has_bn,
            K=k, cin=cin, cout=cout,
        ))
    return params


if __name__ == "__main__":
    B, L, HIDDEN = 2, 16, 32
    key = jax.random.PRNGKey(0)
    x = jax.random.normal(key, (B, 1, L), jnp.float32)  # PPG input, NCL layout

    params = build_cnn1d_params(hidden_size=HIDDEN, num_layers=3, seed=0)
    out = cnn1d_forward(x, params)
    out = jax.block_until_ready(out)

    assert out.shape == (B, 1, L), out.shape
    assert out.dtype == jnp.float32
    assert bool(jnp.all(jnp.isfinite(out)))
    print("KERNEL_OK")
</pallas_src>

<mosaic_0001>
module attributes {stable_mosaic.version = 11 : i64} {
  func.func @_fused_cnn1d_kernel(%arg0: i32, %arg1: memref<1x16x1xf32, #tpu.memory_space<vmem>>, %arg2: memref<7x32xbf16, #tpu.memory_space<vmem>>, %arg3: memref<1x32xf32, #tpu.memory_space<vmem>>, %arg4: memref<1x32xf32, #tpu.memory_space<vmem>>, %arg5: memref<160x32xbf16, #tpu.memory_space<vmem>>, %arg6: memref<1x32xf32, #tpu.memory_space<vmem>>, %arg7: memref<1x32xf32, #tpu.memory_space<vmem>>, %arg8: memref<96x64xbf16, #tpu.memory_space<vmem>>, %arg9: memref<1x64xf32, #tpu.memory_space<vmem>>, %arg10: memref<1x64xf32, #tpu.memory_space<vmem>>, %arg11: memref<192x32xbf16, #tpu.memory_space<vmem>>, %arg12: memref<1x32xf32, #tpu.memory_space<vmem>>, %arg13: memref<1x32xf32, #tpu.memory_space<vmem>>, %arg14: memref<160x32xbf16, #tpu.memory_space<vmem>>, %arg15: memref<1x32xf32, #tpu.memory_space<vmem>>, %arg16: memref<1x32xf32, #tpu.memory_space<vmem>>, %arg17: memref<1x1x224xf32, #tpu.memory_space<vmem>>, %arg18: memref<1x1xf32, #tpu.memory_space<vmem>>, %arg19: memref<1x1xf32, #tpu.memory_space<vmem>>, %arg20: memref<1x1x16xf32, #tpu.memory_space<vmem>>) attributes {dimension_semantics = [#tpu.dimension_semantics<parallel>], iteration_bounds = array<i64: 2>, scalar_prefetch = 0 : i64, scratch_operands = 0 : i64, tpu.core_type = #tpu.core_type<tc>, window_params = [{transform_indices = @transform_0, window_bounds = array<i64: 1, 16, 1>}, {pipeline_mode = #tpu.pipeline_mode<synchronous>, transform_indices = @transform_1, window_bounds = array<i64: 7, 32>}, {pipeline_mode = #tpu.pipeline_mode<synchronous>, transform_indices = @transform_2, window_bounds = array<i64: 1, 32>}, {pipeline_mode = #tpu.pipeline_mode<synchronous>, transform_indices = @transform_3, window_bounds = array<i64: 1, 32>}, {pipeline_mode = #tpu.pipeline_mode<synchronous>, transform_indices = @transform_4, window_bounds = array<i64: 160, 32>}, {pipeline_mode = #tpu.pipeline_mode<synchronous>, transform_indices = @transform_5, window_bounds = array<i64: 1, 32>}, {pipeline_mode = #tpu.pipeline_mode<synchronous>, transform_indices = @transform_6, window_bounds = array<i64: 1, 32>}, {pipeline_mode = #tpu.pipeline_mode<synchronous>, transform_indices = @transform_7, window_bounds = array<i64: 96, 64>}, {pipeline_mode = #tpu.pipeline_mode<synchronous>, transform_indices = @transform_8, window_bounds = array<i64: 1, 64>}, {pipeline_mode = #tpu.pipeline_mode<synchronous>, transform_indices = @transform_9, window_bounds = array<i64: 1, 64>}, {pipeline_mode = #tpu.pipeline_mode<synchronous>, transform_indices = @transform_10, window_bounds = array<i64: 192, 32>}, {pipeline_mode = #tpu.pipeline_mode<synchronous>, transform_indices = @transform_11, window_bounds = array<i64: 1, 32>}, {pipeline_mode = #tpu.pipeline_mode<synchronous>, transform_indices = @transform_12, window_bounds = array<i64: 1, 32>}, {pipeline_mode = #tpu.pipeline_mode<synchronous>, transform_indices = @transform_13, window_bounds = array<i64: 160, 32>}, {pipeline_mode = #tpu.pipeline_mode<synchronous>, transform_indices = @transform_14, window_bounds = array<i64: 1, 32>}, {pipeline_mode = #tpu.pipeline_mode<synchronous>, transform_indices = @transform_15, window_bounds = array<i64: 1, 32>}, {pipeline_mode = #tpu.pipeline_mode<synchronous>, transform_indices = @transform_16, window_bounds = array<i64: 1, 1, 224>}, {pipeline_mode = #tpu.pipeline_mode<synchronous>, transform_indices = @transform_17, window_bounds = array<i64: 1, 1>}, {pipeline_mode = #tpu.pipeline_mode<synchronous>, transform_indices = @transform_18, window_bounds = array<i64: 1, 1>}, {transform_indices = @transform_19, window_bounds = array<i64: 1, 1, 16>}]} {
    %c0 = arith.constant 0 : index
    %c0_0 = arith.constant 0 : index
    %c0_1 = arith.constant 0 : index
    %0 = vector.load %arg1[%c0, %c0_0, %c0_1] : memref<1x16x1xf32, #tpu.memory_space<vmem>>, vector<1x16x1xf32>
    %cst = arith.constant 0.000000e+00 : f32
    %1 = vector.broadcast %cst : f32 to vector<1x3x1xf32>
    %2 = tpu.concatenate %1, %0, %1 in 1 : vector<1x3x1xf32>, vector<1x16x1xf32>, vector<1x3x1xf32> -> vector<1x22x1xf32>
    %3 = vector.extract_strided_slice %2 {offsets = [0, 0, 0], sizes = [1, 16, 1], strides = [1, 1, 1]} : vector<1x22x1xf32> to vector<1x16x1xf32>
    %4 = vector.extract_strided_slice %2 {offsets = [0, 1, 0], sizes = [1, 16, 1], strides = [1, 1, 1]} : vector<1x22x1xf32> to vector<1x16x1xf32>
    %5 = vector.extract_strided_slice %2 {offsets = [0, 2, 0], sizes = [1, 16, 1], strides = [1, 1, 1]} : vector<1x22x1xf32> to vector<1x16x1xf32>
    %6 = vector.extract_strided_slice %2 {offsets = [0, 3, 0], sizes = [1, 16, 1], strides = [1, 1, 1]} : vector<1x22x1xf32> to vector<1x16x1xf32>
    %7 = vector.extract_strided_slice %2 {offsets = [0, 4, 0], sizes = [1, 16, 1], strides = [1, 1, 1]} : vector<1x22x1xf32> to vector<1x16x1xf32>
    %8 = vector.extract_strided_slice %2 {offsets = [0, 5, 0], sizes = [1, 16, 1], strides = [1, 1, 1]} : vector<1x22x1xf32> to vector<1x16x1xf32>
    %9 = vector.extract_strided_slice %2 {offsets = [0, 6, 0], sizes = [1, 16, 1], strides = [1, 1, 1]} : vector<1x22x1xf32> to vector<1x16x1xf32>
    %10 = tpu.concatenate %3, %4, %5, %6, %7, %8, %9 in 2 : vector<1x16x1xf32>, vector<1x16x1xf32>, vector<1x16x1xf32>, vector<1x16x1xf32>, vector<1x16x1xf32>, vector<1x16x1xf32>, vector<1x16x1xf32> -> vector<1x16x7xf32>
    %c0_2 = arith.constant 0 : index
    %c0_3 = arith.constant 0 : index
    %11 = vector.load %arg3[%c0_2, %c0_3] : memref<1x32xf32, #tpu.memory_space<vmem>>, vector<1x32xf32>
    %c0_4 = arith.constant 0 : index
    %c0_5 = arith.constant 0 : index
    %12 = vector.load %arg4[%c0_4, %c0_5] : memref<1x32xf32, #tpu.memory_space<vmem>>, vector<1x32xf32>
    %13 = vector.shape_cast %10 : vector<1x16x7xf32> to vector<16x7xf32>
    %14 = arith.truncf %13 : vector<16x7xf32> to vector<16x7xbf16>
    %c0_6 = arith.constant 0 : index
    %c0_7 = arith.constant 0 : index
    %15 = vector.load %arg2[%c0_6, %c0_7] : memref<7x32xbf16, #tpu.memory_space<vmem>>, vector<7x32xbf16>
    %cst_8 = arith.constant dense<0.000000e+00> : vector<16x32xf32>
    %16 = tpu.matmul %14, %15, %cst_8 {dimension_numbers = #tpu.dot_dimension_numbers<[1], [0], [0], [1], [0, 0, 1, 1], [], []>} : vector<16x7xbf16>, vector<7x32xbf16>, vector<16x32xf32> -> vector<16x32xf32>
    %17 = vector.broadcast %11 : vector<1x32xf32> to vector<16x32xf32>
    %18 = arith.mulf %16, %17 : vector<16x32xf32>
    %19 = vector.broadcast %12 : vector<1x32xf32> to vector<16x32xf32>
    %20 = arith.addf %18, %19 : vector<16x32xf32>
    %cst_9 = arith.constant 0.000000e+00 : f32
    %21 = vector.broadcast %cst_9 : f32 to vector<16x32xf32>
    %22 = arith.maximumf %20, %21 : vector<16x32xf32>
    %23 = vector.shape_cast %22 : vector<16x32xf32> to vector<1x16x32xf32>
    %cst_10 = arith.constant 0.000000e+00 : f32
    %24 = vector.broadcast %cst_10 : f32 to vector<1x2x32xf32>
    %25 = tpu.concatenate %24, %23, %24 in 1 : vector<1x2x32xf32>, vector<1x16x32xf32>, vector<1x2x32xf32> -> vector<1x20x32xf32>
    %26 = vector.extract_strided_slice %25 {offsets = [0, 0, 0], sizes = [1, 16, 32], strides = [1, 1, 1]} : vector<1x20x32xf32> to vector<1x16x32xf32>
    %27 = vector.extract_strided_slice %25 {offsets = [0, 1, 0], sizes = [1, 16, 32], strides = [1, 1, 1]} : vector<1x20x32xf32> to vector<1x16x32xf32>
    %28 = vector.extract_strided_slice %25 {offsets = [0, 2, 0], sizes = [1, 16, 32], strides = [1, 1, 1]} : vector<1x20x32xf32> to vector<1x16x32xf32>
    %29 = vector.extract_strided_slice %25 {offsets = [0, 3, 0], sizes = [1, 16, 32], strides = [1, 1, 1]} : vector<1x20x32xf32> to vector<1x16x32xf32>
    %30 = vector.extract_strided_slice %25 {offsets = [0, 4, 0], sizes = [1, 16, 32], strides = [1, 1, 1]} : vector<1x20x32xf32> to vector<1x16x32xf32>
    %31 = tpu.concatenate %26, %27, %28, %29, %30 in 2 : vector<1x16x32xf32>, vector<1x16x32xf32>, vector<1x16x32xf32>, vector<1x16x32xf32>, vector<1x16x32xf32> -> vector<1x16x160xf32>
    %c0_11 = arith.constant 0 : index
    %c0_12 = arith.constant 0 : index
    %32 = vector.load %arg6[%c0_11, %c0_12] : memref<1x32xf32, #tpu.memory_space<vmem>>, vector<1x32xf32>
    %c0_13 = arith.constant 0 : index
    %c0_14 = arith.constant 0 : index
    %33 = vector.load %arg7[%c0_13, %c0_14] : memref<1x32xf32, #tpu.memory_space<vmem>>, vector<1x32xf32>
    %34 = vector.shape_cast %31 : vector<1x16x160xf32> to vector<16x160xf32>
    %35 = arith.truncf %34 : vector<16x160xf32> to vector<16x160xbf16>
    %c0_15 = arith.constant 0 : index
    %c0_16 = arith.constant 0 : index
    %36 = vector.load %arg5[%c0_15, %c0_16] : memref<160x32xbf16, #tpu.memory_space<vmem>>, vector<160x32xbf16>
    %cst_17 = arith.constant dense<0.000000e+00> : vector<16x32xf32>
    %37 = tpu.matmul %35, %36, %cst_17 {dimension_numbers = #tpu.dot_dimension_numbers<[1], [0], [0], [1], [0, 0, 1, 1], [], []>} : vector<16x160xbf16>, vector<160x32xbf16>, vector<16x32xf32> -> vector<16x32xf32>
    %38 = vector.broadcast %32 : vector<1x32xf32> to vector<16x32xf32>
    %39 = arith.mulf %37, %38 : vector<16x32xf32>
    %40 = vector.broadcast %33 : vector<1x32xf32> to vector<16x32xf32>
    %41 = arith.addf %39, %40 : vector<16x32xf32>
    %cst_18 = arith.constant 0.000000e+00 : f32
    %42 = vector.broadcast %cst_18 : f32 to vector<16x32xf32>
    %43 = arith.maximumf %41, %42 : vector<16x32xf32>
    %44 = vector.shape_cast %43 : vector<16x32xf32> to vector<1x16x32xf32>
    %cst_19 = arith.constant 0.000000e+00 : f32
    %45 = vector.broadcast %cst_19 : f32 to vector<1x1x32xf32>
    %46 = tpu.concatenate %45, %44, %45 in 1 : vector<1x1x32xf32>, vector<1x16x32xf32>, vector<1x1x32xf32> -> vector<1x18x32xf32>
    %47 = vector.extract_strided_slice %46 {offsets = [0, 0, 0], sizes = [1, 16, 32], strides = [1, 1, 1]} : vector<1x18x32xf32> to vector<1x16x32xf32>
    %48 = vector.extract_strided_slice %46 {offsets = [0, 1, 0], sizes = [1, 16, 32], strides = [1, 1, 1]} : vector<1x18x32xf32> to vector<1x16x32xf32>
    %49 = vector.extract_strided_slice %46 {offsets = [0, 2, 0], sizes = [1, 16, 32], strides = [1, 1, 1]} : vector<1x18x32xf32> to vector<1x16x32xf32>
    %50 = tpu.concatenate %47, %48, %49 in 2 : vector<1x16x32xf32>, vector<1x16x32xf32>, vector<1x16x32xf32> -> vector<1x16x96xf32>
    %c0_20 = arith.constant 0 : index
    %c0_21 = arith.constant 0 : index
    %51 = vector.load %arg9[%c0_20, %c0_21] : memref<1x64xf32, #tpu.memory_space<vmem>>, vector<1x64xf32>
    %c0_22 = arith.constant 0 : index
    %c0_23 = arith.constant 0 : index
    %52 = vector.load %arg10[%c0_22, %c0_23] : memref<1x64xf32, #tpu.memory_space<vmem>>, vector<1x64xf32>
    %53 = vector.shape_cast %50 : vector<1x16x96xf32> to vector<16x96xf32>
    %54 = arith.truncf %53 : vector<16x96xf32> to vector<16x96xbf16>
    %c0_24 = arith.constant 0 : index
    %c0_25 = arith.constant 0 : index
    %55 = vector.load %arg8[%c0_24, %c0_25] : memref<96x64xbf16, #tpu.memory_space<vmem>>, vector<96x64xbf16>
    %cst_26 = arith.constant dense<0.000000e+00> : vector<16x64xf32>
    %56 = tpu.matmul %54, %55, %cst_26 {dimension_numbers = #tpu.dot_dimension_numbers<[1], [0], [0], [1], [0, 0, 1, 1], [], []>} : vector<16x96xbf16>, vector<96x64xbf16>, vector<16x64xf32> -> vector<16x64xf32>
    %57 = vector.broadcast %51 : vector<1x64xf32> to vector<16x64xf32>
    %58 = arith.mulf %56, %57 : vector<16x64xf32>
    %59 = vector.broadcast %52 : vector<1x64xf32> to vector<16x64xf32>
    %60 = arith.addf %58, %59 : vector<16x64xf32>
    %cst_27 = arith.constant 0.000000e+00 : f32
    %61 = vector.broadcast %cst_27 : f32 to vector<16x64xf32>
    %62 = arith.maximumf %60, %61 : vector<16x64xf32>
    %63 = vector.shape_cast %62 : vector<16x64xf32> to vector<1x16x64xf32>
    %cst_28 = arith.constant 0.000000e+00 : f32
    %64 = vector.broadcast %cst_28 : f32 to vector<1x1x64xf32>
    %65 = tpu.concatenate %64, %63, %64 in 1 : vector<1x1x64xf32>, vector<1x16x64xf32>, vector<1x1x64xf32> -> vector<1x18x64xf32>
    %66 = vector.extract_strided_slice %65 {offsets = [0, 0, 0], sizes = [1, 16, 64], strides = [1, 1, 1]} : vector<1x18x64xf32> to vector<1x16x64xf32>
    %67 = vector.extract_strided_slice %65 {offsets = [0, 1, 0], sizes = [1, 16, 64], strides = [1, 1, 1]} : vector<1x18x64xf32> to vector<1x16x64xf32>
    %68 = vector.extract_strided_slice %65 {offsets = [0, 2, 0], sizes = [1, 16, 64], strides = [1, 1, 1]} : vector<1x18x64xf32> to vector<1x16x64xf32>
    %69 = tpu.concatenate %66, %67, %68 in 2 : vector<1x16x64xf32>, vector<1x16x64xf32>, vector<1x16x64xf32> -> vector<1x16x192xf32>
    %c0_29 = arith.constant 0 : index
    %c0_30 = arith.constant 0 : index
    %70 = vector.load %arg12[%c0_29, %c0_30] : memref<1x32xf32, #tpu.memory_space<vmem>>, vector<1x32xf32>
    %c0_31 = arith.constant 0 : index
    %c0_32 = arith.constant 0 : index
    %71 = vector.load %arg13[%c0_31, %c0_32] : memref<1x32xf32, #tpu.memory_space<vmem>>, vector<1x32xf32>
    %72 = vector.shape_cast %69 : vector<1x16x192xf32> to vector<16x192xf32>
    %73 = arith.truncf %72 : vector<16x192xf32> to vector<16x192xbf16>
    %c0_33 = arith.constant 0 : index
    %c0_34 = arith.constant 0 : index
    %74 = vector.load %arg11[%c0_33, %c0_34] : memref<192x32xbf16, #tpu.memory_space<vmem>>, vector<192x32xbf16>
    %cst_35 = arith.constant dense<0.000000e+00> : vector<16x32xf32>
    %75 = tpu.matmul %73, %74, %cst_35 {dimension_numbers = #tpu.dot_dimension_numbers<[1], [0], [0], [1], [0, 0, 1, 1], [], []>} : vector<16x192xbf16>, vector<192x32xbf16>, vector<16x32xf32> -> vector<16x32xf32>
    %76 = vector.broadcast %70 : vector<1x32xf32> to vector<16x32xf32>
    %77 = arith.mulf %75, %76 : vector<16x32xf32>
    %78 = vector.broadcast %71 : vector<1x32xf32> to vector<16x32xf32>
    %79 = arith.addf %77, %78 : vector<16x32xf32>
    %cst_36 = arith.constant 0.000000e+00 : f32
    %80 = vector.broadcast %cst_36 : f32 to vector<16x32xf32>
    %81 = arith.maximumf %79, %80 : vector<16x32xf32>
    %82 = vector.shape_cast %81 : vector<16x32xf32> to vector<1x16x32xf32>
    %cst_37 = arith.constant 0.000000e+00 : f32
    %83 = vector.broadcast %cst_37 : f32 to vector<1x2x32xf32>
    %84 = tpu.concatenate %83, %82, %83 in 1 : vector<1x2x32xf32>, vector<1x16x32xf32>, vector<1x2x32xf32> -> vector<1x20x32xf32>
    %85 = vector.extract_strided_slice %84 {offsets = [0, 0, 0], sizes = [1, 16, 32], strides = [1, 1, 1]} : vector<1x20x32xf32> to vector<1x16x32xf32>
    %86 = vector.extract_strided_slice %84 {offsets = [0, 1, 0], sizes = [1, 16, 32], strides = [1, 1, 1]} : vector<1x20x32xf32> to vector<1x16x32xf32>
    %87 = vector.extract_strided_slice %84 {offsets = [0, 2, 0], sizes = [1, 16, 32], strides = [1, 1, 1]} : vector<1x20x32xf32> to vector<1x16x32xf32>
    %88 = vector.extract_strided_slice %84 {offsets = [0, 3, 0], sizes = [1, 16, 32], strides = [1, 1, 1]} : vector<1x20x32xf32> to vector<1x16x32xf32>
    %89 = vector.extract_strided_slice %84 {offsets = [0, 4, 0], sizes = [1, 16, 32], strides = [1, 1, 1]} : vector<1x20x32xf32> to vector<1x16x32xf32>
    %90 = tpu.concatenate %85, %86, %87, %88, %89 in 2 : vector<1x16x32xf32>, vector<1x16x32xf32>, vector<1x16x32xf32>, vector<1x16x32xf32>, vector<1x16x32xf32> -> vector<1x16x160xf32>
    %c0_38 = arith.constant 0 : index
    %c0_39 = arith.constant 0 : index
    %91 = vector.load %arg15[%c0_38, %c0_39] : memref<1x32xf32, #tpu.memory_space<vmem>>, vector<1x32xf32>
    %c0_40 = arith.constant 0 : index
    %c0_41 = arith.constant 0 : index
    %92 = vector.load %arg16[%c0_40, %c0_41] : memref<1x32xf32, #tpu.memory_space<vmem>>, vector<1x32xf32>
    %93 = vector.shape_cast %90 : vector<1x16x160xf32> to vector<16x160xf32>
    %94 = arith.truncf %93 : vector<16x160xf32> to vector<16x160xbf16>
    %c0_42 = arith.constant 0 : index
    %c0_43 = arith.constant 0 : index
    %95 = vector.load %arg14[%c0_42, %c0_43] : memref<160x32xbf16, #tpu.memory_space<vmem>>, vector<160x32xbf16>
    %cst_44 = arith.constant dense<0.000000e+00> : vector<16x32xf32>
    %96 = tpu.matmul %94, %95, %cst_44 {dimension_numbers = #tpu.dot_dimension_numbers<[1], [0], [0], [1], [0, 0, 1, 1], [], []>} : vector<16x160xbf16>, vector<160x32xbf16>, vector<16x32xf32> -> vector<16x32xf32>
    %97 = vector.broadcast %91 : vector<1x32xf32> to vector<16x32xf32>
    %98 = arith.mulf %96, %97 : vector<16x32xf32>
    %99 = vector.broadcast %92 : vector<1x32xf32> to vector<16x32xf32>
    %100 = arith.addf %98, %99 : vector<16x32xf32>
    %cst_45 = arith.constant 0.000000e+00 : f32
    %101 = vector.broadcast %cst_45 : f32 to vector<16x32xf32>
    %102 = arith.maximumf %100, %101 : vector<16x32xf32>
    %103 = vector.shape_cast %102 : vector<16x32xf32> to vector<1x16x32xf32>
    %cst_46 = arith.constant 0.000000e+00 : f32
    %104 = vector.broadcast %cst_46 : f32 to vector<1x3x32xf32>
    %105 = tpu.concatenate %104, %103, %104 in 1 : vector<1x3x32xf32>, vector<1x16x32xf32>, vector<1x3x32xf32> -> vector<1x22x32xf32>
    %106 = vector.extract_strided_slice %105 {offsets = [0, 0, 0], sizes = [1, 16, 32], strides = [1, 1, 1]} : vector<1x22x32xf32> to vector<1x16x32xf32>
    %107 = vector.extract_strided_slice %105 {offsets = [0, 1, 0], sizes = [1, 16, 32], strides = [1, 1, 1]} : vector<1x22x32xf32> to vector<1x16x32xf32>
    %108 = vector.extract_strided_slice %105 {offsets = [0, 2, 0], sizes = [1, 16, 32], strides = [1, 1, 1]} : vector<1x22x32xf32> to vector<1x16x32xf32>
    %109 = vector.extract_strided_slice %105 {offsets = [0, 3, 0], sizes = [1, 16, 32], strides = [1, 1, 1]} : vector<1x22x32xf32> to vector<1x16x32xf32>
    %110 = vector.extract_strided_slice %105 {offsets = [0, 4, 0], sizes = [1, 16, 32], strides = [1, 1, 1]} : vector<1x22x32xf32> to vector<1x16x32xf32>
    %111 = vector.extract_strided_slice %105 {offsets = [0, 5, 0], sizes = [1, 16, 32], strides = [1, 1, 1]} : vector<1x22x32xf32> to vector<1x16x32xf32>
    %112 = vector.extract_strided_slice %105 {offsets = [0, 6, 0], sizes = [1, 16, 32], strides = [1, 1, 1]} : vector<1x22x32xf32> to vector<1x16x32xf32>
    %113 = tpu.concatenate %106, %107, %108, %109, %110, %111, %112 in 2 : vector<1x16x32xf32>, vector<1x16x32xf32>, vector<1x16x32xf32>, vector<1x16x32xf32>, vector<1x16x32xf32>, vector<1x16x32xf32>, vector<1x16x32xf32> -> vector<1x16x224xf32>
    %c0_47 = arith.constant 0 : index
    %c0_48 = arith.constant 0 : index
    %114 = vector.load %arg18[%c0_47, %c0_48] : memref<1x1xf32, #tpu.memory_space<vmem>>, vector<1x1xf32>
    %c0_49 = arith.constant 0 : index
    %c0_50 = arith.constant 0 : index
    %115 = vector.load %arg19[%c0_49, %c0_50] : memref<1x1xf32, #tpu.memory_space<vmem>>, vector<1x1xf32>
    %c0_51 = arith.constant 0 : index
    %c0_52 = arith.constant 0 : index
    %c0_53 = arith.constant 0 : index
    %116 = vector.load %arg17[%c0_51, %c0_52, %c0_53] : memref<1x1x224xf32, #tpu.memory_space<vmem>>, vector<1x1x224xf32>
    %117 = vector.broadcast %116 : vector<1x1x224xf32> to vector<1x16x224xf32>
    %118 = arith.mulf %113, %117 : vector<1x16x224xf32>
    %cst_54 = arith.constant dense<0.000000e+00> : vector<1x16xf32>
    %119 = vector.multi_reduction <add>, %118, %cst_54 [2] : vector<1x16x224xf32> to vector<1x16xf32>
    %120 = vector.broadcast %114 : vector<1x1xf32> to vector<1x16xf32>
    %121 = arith.mulf %119, %120 : vector<1x16xf32>
    %122 = vector.broadcast %115 : vector<1x1xf32> to vector<1x16xf32>
    %123 = arith.addf %121, %122 : vector<1x16xf32>
    %124 = vector.shape_cast %123 : vector<1x16xf32> to vector<1x1x16xf32>
    %c0_55 = arith.constant 0 : index
    %c0_56 = arith.constant 0 : index
    %c0_57 = arith.constant 0 : index
    %125 = vector.load %arg20[%c0_55, %c0_56, %c0_57] : memref<1x1x16xf32, #tpu.memory_space<vmem>>, vector<1x1x16xf32>
    tpu.vector_store %arg20[%c0_55, %c0_56, %c0_57], %124 {strides = array<i32>} : memref<1x1x16xf32, #tpu.memory_space<vmem>>, vector<1x1x16xf32>,
    return
  }
  func.func @transform_0(%arg0: i32) -> (i32, i32, i32) {
    %c0_i32 = arith.constant 0 : i32
    %c0_i32_0 = arith.constant 0 : i32
    %c0_i32_1 = arith.constant 0 : i32
    return %arg0, %c0_i32, %c0_i32_0 : i32, i32, i32
  }
  func.func @transform_1(%arg0: i32) -> (i32, i32) {
    %c0_i32 = arith.constant 0 : i32
    %c0_i32_0 = arith.constant 0 : i32
    %c0_i32_1 = arith.constant 0 : i32
    return %c0_i32, %c0_i32_0 : i32, i32
  }
  func.func @transform_2(%arg0: i32) -> (i32, i32) {
    %c0_i32 = arith.constant 0 : i32
    %c0_i32_0 = arith.constant 0 : i32
    %c0_i32_1 = arith.constant 0 : i32
    return %c0_i32, %c0_i32_0 : i32, i32
  }
  func.func @transform_3(%arg0: i32) -> (i32, i32) {
    %c0_i32 = arith.constant 0 : i32
    %c0_i32_0 = arith.constant 0 : i32
    %c0_i32_1 = arith.constant 0 : i32
    return %c0_i32, %c0_i32_0 : i32, i32
  }
  func.func @transform_4(%arg0: i32) -> (i32, i32) {
    %c0_i32 = arith.constant 0 : i32
    %c0_i32_0 = arith.constant 0 : i32
    %c0_i32_1 = arith.constant 0 : i32
    return %c0_i32, %c0_i32_0 : i32, i32
  }
  func.func @transform_5(%arg0: i32) -> (i32, i32) {
    %c0_i32 = arith.constant 0 : i32
    %c0_i32_0 = arith.constant 0 : i32
    %c0_i32_1 = arith.constant 0 : i32
    return %c0_i32, %c0_i32_0 : i32, i32
  }
  func.func @transform_6(%arg0: i32) -> (i32, i32) {
    %c0_i32 = arith.constant 0 : i32
    %c0_i32_0 = arith.constant 0 : i32
    %c0_i32_1 = arith.constant 0 : i32
    return %c0_i32, %c0_i32_0 : i32, i32
  }
  func.func @transform_7(%arg0: i32) -> (i32, i32) {
    %c0_i32 = arith.constant 0 : i32
    %c0_i32_0 = arith.constant 0 : i32
    %c0_i32_1 = arith.constant 0 : i32
    return %c0_i32, %c0_i32_0 : i32, i32
  }
  func.func @transform_8(%arg0: i32) -> (i32, i32) {
    %c0_i32 = arith.constant 0 : i32
    %c0_i32_0 = arith.constant 0 : i32
    %c0_i32_1 = arith.constant 0 : i32
    return %c0_i32, %c0_i32_0 : i32, i32
  }
  func.func @transform_9(%arg0: i32) -> (i32, i32) {
    %c0_i32 = arith.constant 0 : i32
    %c0_i32_0 = arith.constant 0 : i32
    %c0_i32_1 = arith.constant 0 : i32
    return %c0_i32, %c0_i32_0 : i32, i32
  }
  func.func @transform_10(%arg0: i32) -> (i32, i32) {
    %c0_i32 = arith.constant 0 : i32
    %c0_i32_0 = arith.constant 0 : i32
    %c0_i32_1 = arith.constant 0 : i32
    return %c0_i32, %c0_i32_0 : i32, i32
  }
  func.func @transform_11(%arg0: i32) -> (i32, i32) {
    %c0_i32 = arith.constant 0 : i32
    %c0_i32_0 = arith.constant 0 : i32
    %c0_i32_1 = arith.constant 0 : i32
    return %c0_i32, %c0_i32_0 : i32, i32
  }
  func.func @transform_12(%arg0: i32) -> (i32, i32) {
    %c0_i32 = arith.constant 0 : i32
    %c0_i32_0 = arith.constant 0 : i32
    %c0_i32_1 = arith.constant 0 : i32
    return %c0_i32, %c0_i32_0 : i32, i32
  }
  func.func @transform_13(%arg0: i32) -> (i32, i32) {
    %c0_i32 = arith.constant 0 : i32
    %c0_i32_0 = arith.constant 0 : i32
    %c0_i32_1 = arith.constant 0 : i32
    return %c0_i32, %c0_i32_0 : i32, i32
  }
  func.func @transform_14(%arg0: i32) -> (i32, i32) {
    %c0_i32 = arith.constant 0 : i32
    %c0_i32_0 = arith.constant 0 : i32
    %c0_i32_1 = arith.constant 0 : i32
    return %c0_i32, %c0_i32_0 : i32, i32
  }
  func.func @transform_15(%arg0: i32) -> (i32, i32) {
    %c0_i32 = arith.constant 0 : i32
    %c0_i32_0 = arith.constant 0 : i32
    %c0_i32_1 = arith.constant 0 : i32
    return %c0_i32, %c0_i32_0 : i32, i32
  }
  func.func @transform_16(%arg0: i32) -> (i32, i32, i32) {
    %c0_i32 = arith.constant 0 : i32
    %c0_i32_0 = arith.constant 0 : i32
    %c0_i32_1 = arith.constant 0 : i32
    %c0_i32_2 = arith.constant 0 : i32
    return %c0_i32, %c0_i32_0, %c0_i32_1 : i32, i32, i32
  }
  func.func @transform_17(%arg0: i32) -> (i32, i32) {
    %c0_i32 = arith.constant 0 : i32
    %c0_i32_0 = arith.constant 0 : i32
    %c0_i32_1 = arith.constant 0 : i32
    return %c0_i32, %c0_i32_0 : i32, i32
  }
  func.func @transform_18(%arg0: i32) -> (i32, i32) {
    %c0_i32 = arith.constant 0 : i32
    %c0_i32_0 = arith.constant 0 : i32
    %c0_i32_1 = arith.constant 0 : i32
    return %c0_i32, %c0_i32_0 : i32, i32
  }
  func.func @transform_19(%arg0: i32) -> (i32, i32, i32) {
    %c0_i32 = arith.constant 0 : i32
    %c0_i32_0 = arith.constant 0 : i32
    %c0_i32_1 = arith.constant 0 : i32
    return %arg0, %c0_i32, %c0_i32_0 : i32, i32, i32
  }
}

</mosaic_0001>

<bundles_post_ra>
// kernel: tpu_custom_call.1
= control target key start
LH: loop header
LB: loop body
LE: loop exit
PB: predicated region body
PF: predicated region fallthrough
CT: control target
= control target key end

     0   :  { %s2556_s0 = inlined_call_operand.vmem [shape: f32[2,16,1], index: 0, kind: input, shape index: {}]   ;;  %s2557_s1 = inlined_call_operand.vmem [shape: bf16[7,32], index: 1, kind: input, shape index: {}]   ;;  %s2558_s2 = inlined_call_operand.vmem [shape: f32[1,32], index: 2, kind: input, shape index: {}]   ;;  %s2559_s3 = inlined_call_operand.vmem [shape: f32[1,32], index: 3, kind: input, shape index: {}]   ;;  %s2560_s4 = inlined_call_operand.vmem [shape: bf16[160,32], index: 4, kind: input, shape index: {}]   ;;  %s2561_s5 = inlined_call_operand.vmem [shape: f32[1,32], index: 5, kind: input, shape index: {}]   ;;  %s2562_s6 = inlined_call_operand.vmem [shape: f32[1,32], index: 6, kind: input, shape index: {}]   ;;  %s2563_s7 = inlined_call_operand.vmem [shape: bf16[96,64], index: 7, kind: input, shape index: {}]   ;;  %s2564_s8 = inlined_call_operand.vmem [shape: f32[1,64], index: 8, kind: input, shape index: {}]   ;;  %s2565_s9 = inlined_call_operand.vmem [shape: f32[1,64], index: 9, kind: input, shape index: {}]   ;;  %s2566_s10 = inlined_call_operand.vmem [shape: bf16[192,32], index: 10, kind: input, shape index: {}]   ;;  %s2567_s11 = inlined_call_operand.vmem [shape: f32[1,32], index: 11, kind: input, shape index: {}]   ;;  %s2568_s12 = inlined_call_operand.vmem [shape: f32[1,32], index: 12, kind: input, shape index: {}]   ;;  %s2569_s13 = inlined_call_operand.vmem [shape: bf16[160,32], index: 13, kind: input, shape index: {}]   ;;  %s2570_s14 = inlined_call_operand.vmem [shape: f32[1,32], index: 14, kind: input, shape index: {}]   ;;  %s2571_s15 = inlined_call_operand.vmem [shape: f32[1,32], index: 15, kind: input, shape index: {}]   ;;  %s2572_s16 = inlined_call_operand.vmem [shape: f32[1,1,224], index: 16, kind: input, shape index: {}]   ;;  %s2573_s17 = inlined_call_operand.<no memory space> [shape: f32[1,1], index: 17, kind: input, shape index: {}]   ;;  %s2574_s19 = inlined_call_operand.hbm [shape: f32[2,1,16], index: 19, kind: output, shape index: {}]   ;;  %s2575_s18 = inlined_call_operand.<no memory space> [shape: f32[1,1], index: 18, kind: input, shape index: {}]  }
   0x1   :  { %2583 = sst [smem:[#allocation9_spill]] %s2556_s0  ;;  %v24_v0 = vstv %s2573_s17  ;;  %v26_v1 = vstv %s2575_s18 }
   0x2   :  { %2584 = sst [smem:[#allocation10_spill]] %s2557_s1  ;;  %25 = vst [vmem:[#allocation2] sm:$0x1] %v24_v0 }
   0x3   :  { %2585 = sst [smem:[#allocation11_spill]] %s2558_s2  ;;  %27 = vst [vmem:[#allocation3] sm:$0x1] %v26_v1 }
   0x4   :  { %2586 = sst [smem:[#allocation12_spill]] %s2559_s3 }
   0x5   :  { %2587 = sst [smem:[#allocation13_spill]] %s2560_s4 }
   0x6   :  { %2588 = sst [smem:[#allocation14_spill]] %s2561_s5 }
   0x7   :  { %2589 = sst [smem:[#allocation15_spill]] %s2562_s6 }
   0x8   :  { %28 = vsyncpa [#allocation5], 0 }
   0x9   :  { %30 = vsyncpa [#allocation5 + $0x1], 0  ;;  %s2137_s1 = smov 0   ;;  %s2139_s22 = smov 0  }
   0xa   :  { %s2141_s2 = smov 0   ;;  %s2143_s23 = smov 0  }
   0xb LB: > { %2590 = sst [smem:[#allocation7_spill]] %s2014_s2  ;;  %s2158_s17 = sadd.s32 4294967295, %s2018_s23   ;;  %s2018_s23 = sphi %s2143_s23, %s2608_s23   ;;  %s2014_s2 = sphi %s2141_s2, %s2605_s2   ;;  %s2010_s22 = sphi %s2139_s22, %s2607_s22   ;;  %s2006_s1 = sphi %s2137_s1, %s2606_s1  }
   0xc   : > { %s1615_s18 = sadd.s32 4294967294, %s2018_s23   ;;  %s2162_s24 = sadd.s32 1, %s2018_s23  }
   0xd   : > { %s447_s25 = sadd.s32 1, %s2014_s2  ;;  %s444_s3 = ssub.s32 %s2018_s23, %s2162_s24 }
   0xe   : > { %p457_p0 = scmp.ne.s32.totalorder %s2014_s2, %s2010_s22  ;;  %p445_p1 = scmp.eq.s32.totalorder %s444_s3, 0 }
   0xf   : > { %p458_p2 = scmp.eq.s32.totalorder %s2158_s17, 1  ;;  %p463_p3 = scmp.ne.s32.totalorder %s2010_s22, %s2006_s1 }
  0x10   : > { %p464_p4 = scmp.eq.s32.totalorder %s1615_s18, 1  ;;  %p1618_p7 = scmp.ge.s32.totalorder %s2018_s23, 1 }
  0x11   : > { %s2173_s26 = scalar_select %p445_p1, %s2014_s2, %s447_s25  }
  0x12   : > { %p2175_p5 = por %p458_p2, %p457_p0  ;;  %p2179_p6 = por %p464_p4, %p463_p3 }
  0x13   : > { %2591 = sst [smem:[#allocation8_spill]] %s2173_s26  ;;  %p544_p8 = scmp.lt.s32.totalorder %s2018_s23, 3 }
  0x15   : > { %p545_p9 = pnand %p1618_p7, %p544_p8 }
  0x16   : > { %p599_p10 = scmp.lt.s32.totalorder (!%p545_p9), %s2158_s17, 1  ;;  %s2594_s21 = sld [smem:[#allocation9_spill]] (!%p545_p9) }
  0x17   : > { %548 = sbr.rel (%p545_p9) target bundleno = 1680 (0x690), region = 96  ;;  %s2020_s25 = smov (!%p545_p9), 1  }
  0x18   : > { %s2021_s3 = smov (!%p545_p9), 3   ;;  %s2024_s30 = smov (!%p545_p9), 4  }
  0x19   : > { %s2025_s20 = smov (!%p545_p9), 6   ;;  %s2598_s4 = sld [smem:[#allocation13_spill]] (!%p545_p9) }
  0x1a   : > { %s2599_s5 = sld [smem:[#allocation14_spill]] (!%p545_p9)  ;;  %s2601_s26 = smov (!%p545_p9), 64  }
  0x1b   : > { %s2600_s6 = sld [smem:[#allocation15_spill]] (!%p545_p9) }
  0x1c   : > { %s600_s29 = scalar_select %p599_p10, %s2158_s17, 1  ;;  %vm609_vm0 = vcmask 1042432   ;;  %vm620_vm1 = vcmask 1046528   ;;  %vm644_vm2 = vcmask 1044480   ;;  %vm632_vm3 = vcmask 1045504  }
  0x1d   : > { %vm656_vm4 = vcmask 1043456   ;;  %vm679_vm5 = vcmask 1041408   ;;  %v2026_v45 = vmov 65535   ;;  %vm691_vm6 = vcmask 7168  }
  0x1e   : > { %s1780_s0 = sshll.u32 %s600_s29, 4  ;;  %s2022_s29 = smov 5   ;;  %v717_v46 = vsel %vm609_vm0, 4294967295, %v2026_v45  ;;  %vm694_vm7 = vcmask 15360   ;;  %vm697_vm8 = vcmask 23552   ;;  %vm700_vm9 = vcmask 31744  }
  0x1f   : > { %s603_s18 = scalar_lea.vmem %s2594_s21, %s1780_s0  ;;  %s2023_s0 = smov 2   ;;  %v718_v48 = vsel %vm656_vm4, %v717_v46, 0  ;;  %vm703_vm10 = vcmask 39936   ;;  %vm706_vm11 = vcmask 48128   ;;  %vm713_vm12 = vcmask 56320  }
  0x20   : > { %v605_v2 = vld [vmem:[%s603_s18] sm:$0xff]  ;;  %v606_v3 = vld [vmem:[%s603_s18 + $0x8] sm:$0xff]  ;;  %s2597_s21 = sld [smem:[#allocation12_spill]]  ;;  %s2576_s18 = smov 96   ;;  %vm800_vm13 = vcmask 261120   ;;  %vm803_vm14 = vcmask 523264  }
  0x21   : > { %v610_v4 = vrot.slane %v605_v2, 5  ;;  %v611_v5 = vrot.slane %v606_v3, 5  ;;  %vm806_vm15 = vcmask 785408  }
  0x23   : > { %v2191_v6 = vsel %vm609_vm0, %v610_v4, %v611_v5  ;;  %v2194_v7 = vsel %vm609_vm0, 0.0, %v610_v4  ;;  %v617_v8 = vsel %vm609_vm0, %v611_v5, 0.0 }
  0x24   : > { %v621_v9 = vrot.slane %v2194_v7, 1  ;;  %v622_v10 = vrot.slane %v2191_v6, 1  ;;  %v624_v11 = vrot.slane %v617_v8, 1  ;;  %v645_v12 = vrot.slane %v2194_v7, 3 }
  0x25   : > { %v646_v13 = vrot.slane %v2191_v6, 3  ;;  %v648_v14 = vrot.slane %v617_v8, 3  ;;  %v633_v15 = vrot.slane %v2194_v7, 2  ;;  %v634_v16 = vrot.slane %v2191_v6, 2 }
  0x26   : > { %v623_v17 = vsel %vm620_vm1, %v621_v9, %v622_v10  ;;  %v625_v18 = vsel %vm620_vm1, %v622_v10, %v624_v11  ;;  %v636_v19 = vrot.slane %v617_v8, 2  ;;  %v657_v20 = vrot.slane %v2194_v7, 4 }
  0x27   : > { %v1869_v21 = vpack.i.bf16 %v625_v18, %v623_v17  ;;  %v647_v22 = vsel %vm644_vm2, %v645_v12, %v646_v13  ;;  %v649_v23 = vsel %vm644_vm2, %v646_v13, %v648_v14  ;;  %v658_v25 = vrot.slane %v2191_v6, 4  ;;  %v1947_v18 = vld [vmem:[%s2597_s21] ss:$0 sm:$0xff]  ;;  %s2602_s21 = smov 32  }
  0x28   : > { %v1879_v24 = vpack.i.bf16 %v649_v23, %v647_v22  ;;  %v660_v26 = vrot.slane %v617_v8, 4  ;;  %v635_v27 = vsel %vm632_vm3, %v633_v15, %v634_v16  ;;  %v668_v28 = vrot.slane %v2194_v7, 5 }
  0x29   : > { %1870 = vrot.lane.b32.xlu0 %v1869_v21, %s2020_s25  ;;  %v669_v29 = vrot.slane %v2191_v6, 5  ;;  %v671_v30 = vrot.slane %v617_v8, 5  ;;  %v637_v31 = vsel %vm632_vm3, %v634_v16, %v636_v19  ;;  %v659_v32 = vsel %vm656_vm4, %v657_v20, %v658_v25  ;;  %s2595_s25 = sld [smem:[#allocation10_spill]] }
  0x2a   : > { %1880 = vrot.lane.b32.xlu1 %v1879_v24, %s2021_s3  ;;  %v661_v33 = vsel %vm656_vm4, %v658_v25, %v660_v26  ;;  %v680_v34 = vrot.slane %v2194_v7, 6  ;;  %v681_v37 = vrot.slane %v2191_v6, 6  ;;  %v683_v38 = vrot.slane %v617_v8, 6  ;;  %s2580_s3 = smov 32  }
  0x2b   : > { %v670_v35 = vsel %vm609_vm0, %v668_v28, %v669_v29  ;;  %v672_v36 = vsel %vm609_vm0, %v669_v29, %v671_v30  ;;  %v1874_v40 = vpack.i.bf16 %v637_v31, %v635_v27  ;;  %v1884_v41 = vpack.i.bf16 %v661_v33, %v659_v32 }
  0x2c   : > { %v1889_v39 = vpack.i.bf16 %v672_v36, %v670_v35  ;;  %v682_v42 = vsel %vm679_vm5, %v680_v34, %v681_v37  ;;  %v684_v43 = vsel %vm679_vm5, %v681_v37, %v683_v38 }
  0x2d   : > { %v1894_v44 = vpack.i.bf16 %v684_v43, %v682_v42 }
  0x2e   : > { %1890 = vrot.lane.b32.xlu2 %v1889_v39, %s2022_s29 }
  0x2f   : > { %v712_v47 = vld [vmem:[%s2595_s25] sm:$0xf]  ;;  %s2578_s25 = smov 64  }
  0x30   : > { %v720_v49 = vand.u32 %v718_v48, %v712_v47 }
  0x31   : > { %1875 = vrot.lane.b32.xlu0 %v1874_v40, %s2023_s0  ;;  %s2596_s0 = sld [smem:[#allocation11_spill]] }
  0x32   : > { %1885 = vrot.lane.b32.xlu1 %v1884_v41, %s2024_s30  ;;  %729 = vmatpush.bf16.msra.mxu0 %v720_v49 }
  0x36   : > { %1895 = vrot.lane.b32.xlu2 %v1894_v44, %s2025_s20 }
  0x37   : > { %v1946_v17 = vld [vmem:[%s2596_s0] ss:$0 sm:$0xff] }
  0x88   : > { %v1891_v50 = vpop.permute.xlu2 %1890 }
  0x89   : > { %v1893_v55 = vunpack.i.h.bf16 %v1891_v50  ;;  %v1892_v9 = vunpack.i.l.bf16 %v1891_v50  ;;  %v1788_v50 = vld [vmem:[%s2598_s4 + $0x38] sm:$0xff] }
  0x8a   : > { %896 = vmatpush.bf16.msra.mxu1 %v1788_v50 }
  0x90   : > { %v1896_v57 = vpop.permute.xlu2 %1895 }
  0x91   : > { %v1898_v5 = vunpack.i.h.bf16 %v1896_v57  ;;  %v1897_v8 = vunpack.i.l.bf16 %v1896_v57  ;;  %v1781_v57 = vld [vmem:[%s2598_s4] sm:$0xff] }
  0x9b   : > { %v1871_v51 = vpop.permute.xlu0 %1870 }
  0x9c   : > { %v1881_v52 = vpop.permute.xlu1 %1880  ;;  %v1873_v53 = vunpack.i.h.bf16 %v1871_v51  ;;  %v1872_v54 = vunpack.i.l.bf16 %v1871_v51  ;;  %v1787_v51 = vld [vmem:[%s2598_s4 + $0x30] sm:$0xff] }
  0x9d   : > { %v1883_v58 = vunpack.i.h.bf16 %v1881_v52  ;;  %v1882_v59 = vunpack.i.l.bf16 %v1881_v52  ;;  %897 = vmatpush.bf16.msra.mxu1 %v1787_v51  ;;  %v1786_v52 = vld [vmem:[%s2598_s4 + $0x28] sm:$0xff] }
  0x9e   : > { %v693_v63 = vsel %vm691_vm6, %v2191_v6, %v1873_v53  ;;  %v692_v0 = vsel %vm691_vm6, %v2194_v7, %v1872_v54  ;;  %v1785_v53 = vld [vmem:[%s2598_s4 + $0x20] sm:$0xff]  ;;  %v1784_v54 = vld [vmem:[%s2598_s4 + $0x18] sm:$0xff]  ;;  %vm938_vm6 = vcmask 1040384  }
  0xa1   : > { %898 = vmatpush.bf16.msra.mxu1 %v1786_v52 }
  0xa3   : > { %v1876_v56 = vpop.permute.xlu0 %1875 }
  0xa4   : > { %v1878_v60 = vunpack.i.h.bf16 %v1876_v56  ;;  %v1877_v61 = vunpack.i.l.bf16 %v1876_v56  ;;  %v1886_v62 = vpop.permute.xlu1 %1885  ;;  %v1782_v56 = vld [vmem:[%s2598_s4 + $0x8] sm:$0xff] }
  0xa5   : > { %v1888_v1 = vunpack.i.h.bf16 %v1886_v62  ;;  %v1887_v2 = vunpack.i.l.bf16 %v1886_v62  ;;  %899 = vmatpush.bf16.msra.mxu1 %v1785_v53 }
  0xa6   : > { %v695_v3 = vsel %vm694_vm7, %v692_v0, %v1877_v61  ;;  %v696_v4 = vsel %vm694_vm7, %v693_v63, %v1878_v60 }
  0xa7   : > { %v698_v10 = vsel %vm697_vm8, %v695_v3, %v1882_v59  ;;  %v699_v11 = vsel %vm697_vm8, %v696_v4, %v1883_v58  ;;  %v1790_v58 = vld [vmem:[%s2598_s4 + $0x48] sm:$0xff]  ;;  %v1789_v59 = vld [vmem:[%s2598_s4 + $0x40] sm:$0xff] }
  0xa8   : > { %v701_v12 = vsel %vm700_vm9, %v698_v10, %v1887_v2  ;;  %v702_v6 = vsel %vm700_vm9, %v699_v11, %v1888_v1 }
  0xa9   : > { %v704_v7 = vsel %vm703_vm10, %v701_v12, %v1892_v9  ;;  %v705_v13 = vsel %vm703_vm10, %v702_v6, %v1893_v55  ;;  %900 = vmatpush.bf16.msra.mxu1 %v1784_v54  ;;  %v1783_v55 = vld [vmem:[%s2598_s4 + $0x10] sm:$0xff]  ;;  %v1791_v54 = vld [vmem:[%s2563_s7] sm:$0xff] }
  0xaa   : > { %v707_v14 = vsel %vm706_vm11, %v704_v7, %v1897_v8  ;;  %v708_v15 = vsel %vm706_vm11, %v705_v13, %v1898_v5 }
  0xab   : > { %v711_v16 = vpack.c.bf16 %v708_v15, %v707_v14 }
  0xad   : > { %1621 = vmatmul.msk.bf16.vlgmr.msra.gmra.mxu0 %vm713_vm12, %v711_v16  ;;  %901 = vmatpush.bf16.msra.mxu1 %v1783_v55 }
  0xb1   : > { %902 = vmatpush.bf16.msra.mxu1 %v1782_v56 }
  0xb5   : > { %903 = vmatpush.bf16.msra.mxu1 %v1781_v57 }
  0xb9   : > { %916 = vmatpush.bf16.msrb.mxu1 %v1790_v58 }
  0xbd   : > { %917 = vmatpush.bf16.msrb.mxu1 %v1789_v59 }
 0x12a   : > { %v731_v19 = vpop.f32.mrf.mxu0 }
 0x12b   : > { %v739_v20 = vmul.f32 %v1946_v17, %v731_v19 }
 0x12d   : > { %v744_v21 = vadd.f32 %v1947_v18, %v739_v20  ;;  %v1796_v20 = vld [vmem:[%s2563_s7 + $0x28] sm:$0xff] }
 0x12e   : > { %1031 = vmatpush.bf16.msra.mxu3 %v1796_v20 }
 0x12f   : > { %v746_v22 = vmax.f32 %v744_v21, 0.0  ;;  %v1795_v21 = vld [vmem:[%s2563_s7 + $0x20] sm:$0xff] }
 0x131   : > { %v750_v25 = vrot.slane %v746_v22, 6  ;;  %v1948_v22 = vld [vmem:[%s2599_s5] ss:$0 sm:$0xff]  ;;  %s1556_s5 = scalar_lea.hbm %s2574_s19, %s2158_s17 }
 0x132   : > { %v733_v23 = vpop.f32.mrf.mxu0  ;;  %1032 = vmatpush.bf16.msra.mxu3 %v1795_v21  ;;  %s1560_s29 = sshll.u32 %s1556_s5, 4  ;;  %s1561_s29 = int_to_ptr.hbm [resolvable:$true] %s1560_s29 }
 0x133   : > { %v740_v24 = vmul.f32 %v1946_v17, %v733_v23  ;;  %v2243_v28 = vsel %vm679_vm5, 0.0, %v750_v25  ;;  %v1794_v23 = vld [vmem:[%s2563_s7 + $0x18] sm:$0xff]  ;;  %s1970_s0 = sshra.s32 %s1561_s29, 4  ;;  %s1971_s0 = int_to_ptr.hbm [resolvable:$true] %s1970_s0 }
 0x134   : > { %v782_v32 = vrot.slane %v2243_v28, 3  ;;  %v771_v35 = vrot.slane %v2243_v28, 2  ;;  %v760_v38 = vrot.slane %v2243_v28, 1  ;;  %v793_v14 = vrot.slane %v2243_v28, 4  ;;  %s1972_s17 = scalar_lea.hbm %s1971_s0, 1  ;;  %p1977_p0 = scmp.lt.s32.totalorder %s1971_s0, %s2574_s19 }
 0x135   : > { %v745_v26 = vadd.f32 %v1947_v18, %v740_v24  ;;  %p1973_p11 = scmp.ne.s32.totalorder %s1971_s0, %s1972_s17 }
 0x136   : > { %1033 = vmatpush.bf16.msra.mxu3 %v1794_v23  ;;  %v1798_v23 = vld [vmem:[%s2566_s10 + $0x8] sm:$0xff] }
 0x137   : > { %v747_v27 = vmax.f32 %v745_v26, 0.0  ;;  %v1949_v26 = vld [vmem:[%s2600_s6] ss:$0 sm:$0xff]  ;;  %p1974_p12 = pnand %p1973_p11, %p2175_p5 }
 0x139   : > { %v751_v29 = vrot.slane %v747_v27, 6  ;;  %p1975_p13 = pneg %p1974_p12 }
 0x13b   : > { %v2246_v30 = vsel %vm679_vm5, %v750_v25, %v751_v29  ;;  %v2249_v31 = vsel %vm679_vm5, %v751_v29, 0.0 }
 0x13c   : > { %v783_v33 = vrot.slane %v2246_v30, 3  ;;  %v785_v34 = vrot.slane %v2249_v31, 3  ;;  %v772_v36 = vrot.slane %v2246_v30, 2  ;;  %v774_v37 = vrot.slane %v2249_v31, 2 }
 0x13d   : > { %v761_v39 = vrot.slane %v2246_v30, 1  ;;  %v763_v40 = vrot.slane %v2249_v31, 1  ;;  %v796_v7 = vrot.slane %v2249_v31, 4  ;;  %v794_v13 = vrot.slane %v2246_v30, 4 }
 0x13e   : > { %v784_v41 = vsel %vm644_vm2, %v782_v32, %v783_v33  ;;  %v786_v42 = vsel %vm644_vm2, %v783_v33, %v785_v34  ;;  %v773_v43 = vsel %vm632_vm3, %v771_v35, %v772_v36  ;;  %v775_v45 = vsel %vm632_vm3, %v772_v36, %v774_v37 }
 0x13f   : > { %v1909_v44 = vpack.i.bf16 %v786_v42, %v784_v41  ;;  %v762_v46 = vsel %vm620_vm1, %v760_v38, %v761_v39  ;;  %v764_v47 = vsel %vm620_vm1, %v761_v39, %v763_v40  ;;  %v1904_v48 = vpack.i.bf16 %v775_v45, %v773_v43 }
 0x140   : > { %v1899_v49 = vpack.i.bf16 %v764_v47, %v762_v46  ;;  %v795_v15 = vsel %vm656_vm4, %v793_v14, %v794_v13  ;;  %v797_v16 = vsel %vm656_vm4, %v794_v13, %v796_v7  ;;  %v1801_v13 = vld [vmem:[%s2566_s10 + $0x20] sm:$0xff] }
 0x141   : > { %1910 = vrot.lane.b32.xlu2 %v1909_v44, %s2576_s18  ;;  %1905 = vrot.lane.b32.xlu1 %v1904_v48, %s2578_s25  ;;  %v812_v17 = vpack.c.bf16 %v797_v16, %v795_v15  ;;  %v1800_v15 = vld [vmem:[%s2566_s10 + $0x18] sm:$0xff]  ;;  %s2603_s18 = smov 96  }
 0x142   : > { %1900 = vrot.lane.b32.xlu0 %v1899_v49, %s2580_s3 }
 0x19b   : > { %v1911_v60 = vpop.permute.xlu2 %1910 }
 0x19c   : > { %v1913_v3 = vunpack.i.h.bf16 %v1911_v60  ;;  %v1912_v4 = vunpack.i.l.bf16 %v1911_v60 }
 0x1b3   : > { %v1906_v61 = vpop.permute.xlu1 %1905 }
 0x1b4   : > { %v1901_v62 = vpop.permute.xlu0 %1900  ;;  %v1908_v63 = vunpack.i.h.bf16 %v1906_v61  ;;  %v1907_v0 = vunpack.i.l.bf16 %v1906_v61 }
 0x1b5   : > { %v1903_v1 = vunpack.i.h.bf16 %v1901_v62  ;;  %v1902_v2 = vunpack.i.l.bf16 %v1901_v62 }
 0x1b7   : > { %v802_v5 = vsel %vm800_vm13, %v2246_v30, %v1903_v1  ;;  %v801_v8 = vsel %vm800_vm13, %v2243_v28, %v1902_v2  ;;  %v1793_v28 = vld [vmem:[%s2563_s7 + $0x10] sm:$0xff]  ;;  %v1792_v30 = vld [vmem:[%s2563_s7 + $0x8] sm:$0xff]  ;;  %v1808_v2 = vld [vmem:[%s2566_s10 + $0x58] sm:$0xff] }
 0x1b8   : > { %v804_v9 = vsel %vm803_vm14, %v801_v8, %v1907_v0  ;;  %v805_v10 = vsel %vm803_vm14, %v802_v5, %v1908_v63  ;;  %1034 = vmatpush.bf16.msra.mxu3 %v1793_v28  ;;  %1208 = vmatpush.bf16.msra.mxu2 %v1808_v2  ;;  %v1805_v5 = vld [vmem:[%s2566_s10 + $0x40] sm:$0xff]  ;;  %v1804_v8 = vld [vmem:[%s2566_s10 + $0x38] sm:$0xff] }
 0x1b9   : > { %v807_v11 = vsel %vm806_vm15, %v804_v9, %v1912_v4  ;;  %v808_v12 = vsel %vm806_vm15, %v805_v10, %v1913_v3  ;;  %v1807_v3 = vld [vmem:[%s2566_s10 + $0x50] sm:$0xff]  ;;  %v1806_v4 = vld [vmem:[%s2566_s10 + $0x48] sm:$0xff]  ;;  %1190 = vmatpush.bf16.msrb.mxu0 %v1804_v8  ;;  %v1950_v10 = vld [vmem:[%s2564_s8] ss:$0 sm:$0xff] }
 0x1ba   : > { %v811_v6 = vpack.c.bf16 %v808_v12, %v807_v11  ;;  %v1803_v9 = vld [vmem:[%s2566_s10 + $0x30] sm:$0xff]  ;;  %v1802_v11 = vld [vmem:[%s2566_s10 + $0x28] sm:$0xff]  ;;  %v1951_v12 = vld [vmem:[%s2565_s9] ss:$0 sm:$0xff] }
 0x1bc   : > { %904 = vmatmul.bf16.vlgmr.msra.gmra.mxu1 %v811_v6  ;;  %1035 = vmatpush.bf16.msra.mxu3 %v1792_v30 }
 0x1bd   : > { %1209 = vmatpush.bf16.msra.mxu2 %v1807_v3  ;;  %1191 = vmatpush.bf16.msrb.mxu0 %v1803_v9 }
 0x1c0   : > { %1036 = vmatpush.bf16.msra.mxu3 %v1791_v54 }
 0x1c1   : > { %1210 = vmatpush.bf16.msra.mxu2 %v1806_v4  ;;  %1192 = vmatpush.bf16.msrb.mxu0 %v1802_v11 }
 0x1c5   : > { %1211 = vmatpush.bf16.msra.mxu2 %v1805_v5  ;;  %1193 = vmatpush.bf16.msrb.mxu0 %v1801_v13 }
 0x1c9   : > { %1194 = vmatpush.bf16.msrb.mxu0 %v1800_v15 }
 0x1cc   : > { %1662 = vmatmul.msk.bf16.vlgmr.msrb.gmra.mxu1 %vm800_vm13, %v812_v17 }
 0x239   : > { %v905_v18 = vpop.f32.mrf.mxu1 }
 0x241   : > { %v907_v19 = vpop.f32.mrf.mxu1 }
 0x249   : > { %v919_v24 = vpop.f32.mrf.mxu1 }
 0x24a   : > { %v920_v25 = vadd.f32 %v919_v24, %v905_v18 }
 0x24c   : > { %v927_v27 = vmul.f32 %v1948_v22, %v920_v25 }
 0x24e   : > { %v932_v29 = vadd.f32 %v1949_v26, %v927_v27 }
 0x250   : > { %v934_v31 = vmax.f32 %v932_v29, 0.0 }
 0x251   : > { %v921_v32 = vpop.f32.mrf.mxu1 }
 0x252   : > { %v922_v33 = vadd.f32 %v921_v32, %v907_v19  ;;  %v939_v35 = vrot.slane %v934_v31, 7  ;;  %v1799_v19 = vld [vmem:[%s2566_s10 + $0x10] sm:$0xff] }
 0x253   : > { %1195 = vmatpush.bf16.msrb.mxu0 %v1799_v19 }
 0x254   : > { %v928_v34 = vmul.f32 %v1948_v22, %v922_v33  ;;  %v945_v38 = vsel %vm938_vm6, 0.0, %v939_v35 }
 0x255   : > { %v960_v42 = vrot.slane %v945_v38, 2  ;;  %v949_v43 = vrot.slane %v945_v38, 1 }
 0x256   : > { %v933_v36 = vadd.f32 %v1949_v26, %v928_v34 }
 0x257   : > { %1196 = vmatpush.bf16.msrb.mxu0 %v1798_v23 }
 0x258   : > { %v935_v37 = vmax.f32 %v933_v36, 0.0 }
 0x25a   : > { %v940_v39 = vrot.slane %v935_v37, 7 }
 0x25c   : > { %v941_v40 = vsel %vm938_vm6, %v939_v35, %v940_v39  ;;  %v946_v41 = vsel %vm938_vm6, %v940_v39, 0.0 }
 0x25d   : > { %v952_v44 = vrot.slane %v946_v41, 1  ;;  %v963_v45 = vrot.slane %v946_v41, 2  ;;  %v961_v46 = vrot.slane %v941_v40, 2  ;;  %v950_v47 = vrot.slane %v941_v40, 1 }
 0x25f   : > { %v962_v48 = vsel %vm632_vm3, %v960_v42, %v961_v46  ;;  %v964_v49 = vsel %vm632_vm3, %v961_v46, %v963_v45  ;;  %v951_v50 = vsel %vm620_vm1, %v949_v43, %v950_v47  ;;  %v953_v51 = vsel %vm620_vm1, %v950_v47, %v952_v44  ;;  %v1818_v47 = vld [vmem:[%s2569_s13 + $0x48] sm:$0xff] }
 0x260   : > { %v1919_v52 = vpack.i.bf16 %v964_v49, %v962_v48  ;;  %v1914_v53 = vpack.i.bf16 %v953_v51, %v951_v50  ;;  %1395 = vmatpush.bf16.msrb.mxu3 %v1818_v47  ;;  %v1817_v48 = vld [vmem:[%s2569_s13 + $0x40] sm:$0xff] }
 0x261   : > { %v1952_v50 = vld [vmem:[%s2567_s11] ss:$0 sm:$0xff] }
 0x262   : > { %1920 = vrot.lane.b32.xlu1 %v1919_v52, %s2601_s26  ;;  %1915 = vrot.lane.b32.xlu0 %v1914_v53, %s2602_s21  ;;  %v1953_v53 = vld [vmem:[%s2568_s12] ss:$0 sm:$0xff] }
 0x264   : > { %1396 = vmatpush.bf16.msrb.mxu3 %v1817_v48 }
 0x2d4   : > { %v1921_v55 = vpop.permute.xlu1 %1920  ;;  %v1916_v56 = vpop.permute.xlu0 %1915 }
 0x2d5   : > { %v1923_v57 = vunpack.i.h.bf16 %v1921_v55  ;;  %v1922_v58 = vunpack.i.l.bf16 %v1921_v55  ;;  %v1918_v59 = vunpack.i.h.bf16 %v1916_v56  ;;  %v1917_v60 = vunpack.i.l.bf16 %v1916_v56 }
 0x2d7   : > { %v972_v61 = vsel %vm800_vm13, %v941_v40, %v1918_v59  ;;  %v971_v62 = vsel %vm800_vm13, %v945_v38, %v1917_v60  ;;  %v1797_v40 = vld [vmem:[%s2566_s10] sm:$0xff] }
 0x2d8   : > { %v973_v63 = vsel %vm803_vm14, %v971_v62, %v1922_v58  ;;  %v974_v0 = vsel %vm803_vm14, %v972_v61, %v1923_v57  ;;  %1197 = vmatpush.bf16.msrb.mxu0 %v1797_v40 }
 0x2d9   : > { %v977_v1 = vpack.c.bf16 %v974_v0, %v973_v63 }
 0x2db   : > { %1687 = vmatmul.msk.bf16.vlgmr.msra.gmra.mxu3 %vm806_vm15, %v977_v1 }
 0x35e   : > { %v1038_v6 = vpop.f32.mrf.mxu3 }
 0x35f   : > { %v1046_v7 = vmul.f32 %v1950_v10, %v1038_v6 }
 0x361   : > { %v1051_v14 = vadd.f32 %v1951_v12, %v1046_v7 }
 0x363   : > { %v1053_v16 = vmax.f32 %v1051_v14, 0.0 }
 0x365   : > { %v1057_v20 = vrot.slane %v1053_v16, 7 }
 0x366   : > { %v1040_v17 = vpop.f32.mrf.mxu3 }
 0x367   : > { %v1047_v18 = vmul.f32 %v1950_v10, %v1040_v17  ;;  %v1063_v24 = vsel %vm938_vm6, 0.0, %v1057_v20 }
 0x368   : > { %v1067_v26 = vrot.slane %v1063_v24, 1  ;;  %v1078_v27 = vrot.slane %v1063_v24, 2 }
 0x369   : > { %v1052_v21 = vadd.f32 %v1951_v12, %v1047_v18 }
 0x36b   : > { %v1054_v22 = vmax.f32 %v1052_v21, 0.0 }
 0x36d   : > { %v1058_v25 = vrot.slane %v1054_v22, 7 }
 0x36f   : > { %v1059_v28 = vsel %vm938_vm6, %v1057_v20, %v1058_v25  ;;  %v1064_v29 = vsel %vm938_vm6, %v1058_v25, 0.0 }
 0x370   : > { %v1070_v30 = vrot.slane %v1064_v29, 1  ;;  %v1081_v31 = vrot.slane %v1064_v29, 2  ;;  %v1079_v32 = vrot.slane %v1059_v28, 2  ;;  %v1068_v33 = vrot.slane %v1059_v28, 1  ;;  %v1815_v29 = vld [vmem:[%s2569_s13 + $0x30] sm:$0xff] }
 0x372   : > { %v1080_v34 = vsel %vm632_vm3, %v1078_v27, %v1079_v32  ;;  %v1082_v35 = vsel %vm632_vm3, %v1079_v32, %v1081_v31  ;;  %v1069_v36 = vsel %vm620_vm1, %v1067_v26, %v1068_v33  ;;  %v1071_v37 = vsel %vm620_vm1, %v1068_v33, %v1070_v30  ;;  %v1814_v30 = vld [vmem:[%s2569_s13 + $0x28] sm:$0xff]  ;;  %v1813_v31 = vld [vmem:[%s2569_s13 + $0x20] sm:$0xff]  ;;  %v1812_v32 = vld [vmem:[%s2569_s13 + $0x18] sm:$0xff] }
 0x373   : > { %v1090_v38 = vpack.c.bf16 %v1082_v35, %v1080_v34  ;;  %v1924_v39 = vpack.i.bf16 %v1071_v37, %v1069_v36  ;;  %v1811_v33 = vld [vmem:[%s2569_s13 + $0x10] sm:$0xff]  ;;  %v1810_v34 = vld [vmem:[%s2569_s13 + $0x8] sm:$0xff]  ;;  %v1809_v35 = vld [vmem:[%s2569_s13] sm:$0xff] }
 0x375   : > { %1736 = vmatmul.msk.bf16.vlgmr.msra.gmra.mxu2 %vm803_vm14, %v1090_v38  ;;  %1925 = vrot.lane.b32.xlu2 %v1924_v39, %s2601_s26 }
 0x3cf   : > { %v1926_v41 = vpop.permute.xlu2 %1925 }
 0x3d0   : > { %v1928_v42 = vunpack.i.h.bf16 %v1926_v41  ;;  %v1927_v43 = vunpack.i.l.bf16 %v1926_v41 }
 0x3d2   : > { %v1085_v44 = vsel %vm803_vm14, %v1063_v24, %v1927_v43  ;;  %v1086_v45 = vsel %vm803_vm14, %v1059_v28, %v1928_v42  ;;  %v1816_v28 = vld [vmem:[%s2569_s13 + $0x38] sm:$0xff] }
 0x3d3   : > { %v1089_v46 = vpack.c.bf16 %v1086_v45, %v1085_v44  ;;  %1375 = vmatpush.bf16.msrb.mxu2 %v1816_v28 }
 0x3d5   : > { %1198 = vmatmul.bf16.vlgmr.msrb.gmra.mxu0 %v1089_v46 }
 0x3d7   : > { %1376 = vmatpush.bf16.msrb.mxu2 %v1815_v29 }
 0x3db   : > { %1377 = vmatpush.bf16.msrb.mxu2 %v1814_v30 }
 0x3df   : > { %1378 = vmatpush.bf16.msrb.mxu2 %v1813_v31 }
 0x3e3   : > { %1379 = vmatpush.bf16.msrb.mxu2 %v1812_v32  ;;  %v1499_v32 = vld [vmem:[#allocation2] sm:$0x1] }
 0x3e7   : > { %1380 = vmatpush.bf16.msrb.mxu2 %v1811_v33  ;;  %v2030_v33 = vmov 0  }
 0x3e8   : > { %1944 = vset.pattern.permute.xlu1 %v2030_v33  ;;  %1945 = vset.pattern.permute.xlu0 %v2030_v33 }
 0x3eb   : > { %1381 = vmatpush.bf16.msrb.mxu2 %v1810_v34  ;;  %v1500_v34 = vld [vmem:[#allocation3] sm:$0x1] }
 0x3ef   : > { %1382 = vmatpush.bf16.msrb.mxu2 %v1809_v35 }
 0x3f8   : > { %v1213_v49 = vpop.f32.mrf.mxu2 }
 0x400   : > { %v1215_v57 = vpop.f32.mrf.mxu2 }
 0x452   : > { %v1199_v51 = vpop.f32.mrf.mxu0 }
 0x453   : > { %v1214_v52 = vadd.f32 %v1213_v49, %v1199_v51 }
 0x455   : > { %v1221_v54 = vmul.f32 %v1952_v50, %v1214_v52 }
 0x457   : > { %v1226_v55 = vadd.f32 %v1953_v53, %v1221_v54 }
 0x459   : > { %v1228_v56 = vmax.f32 %v1226_v55, 0.0 }
 0x45a   : > { %v1201_v58 = vpop.f32.mrf.mxu0 }
 0x45b   : > { %v1216_v59 = vadd.f32 %v1215_v57, %v1201_v58  ;;  %v1232_v60 = vrot.slane %v1228_v56, 6  ;;  %v1955_v56 = vld [vmem:[%s2571_s15] ss:$0 sm:$0xff] }
 0x45d   : > { %v1222_v61 = vmul.f32 %v1952_v50, %v1216_v59  ;;  %v1238_v63 = vsel %vm679_vm5, 0.0, %v1232_v60 }
 0x45e   : > { %v1275_v2 = vrot.slane %v1238_v63, 4  ;;  %v1264_v3 = vrot.slane %v1238_v63, 3  ;;  %v1253_v8 = vrot.slane %v1238_v63, 2  ;;  %v1242_v9 = vrot.slane %v1238_v63, 1 }
 0x45f   : > { %v1227_v62 = vadd.f32 %v1953_v53, %v1222_v61  ;;  %v1954_v53 = vld [vmem:[%s2570_s14] ss:$0 sm:$0xff] }
 0x461   : > { %v1229_v0 = vmax.f32 %v1227_v62, 0.0 }
 0x463   : > { %v1233_v1 = vrot.slane %v1229_v0, 6 }
 0x465   : > { %v1234_v4 = vsel %vm679_vm5, %v1232_v60, %v1233_v1  ;;  %v1239_v5 = vsel %vm679_vm5, %v1233_v1, 0.0 }
 0x466   : > { %v1278_v10 = vrot.slane %v1239_v5, 4  ;;  %v1276_v11 = vrot.slane %v1234_v4, 4  ;;  %v1265_v12 = vrot.slane %v1234_v4, 3  ;;  %v1267_v6 = vrot.slane %v1239_v5, 3 }
 0x467   : > { %v1254_v7 = vrot.slane %v1234_v4, 2  ;;  %v1256_v13 = vrot.slane %v1239_v5, 2  ;;  %v1243_v14 = vrot.slane %v1234_v4, 1  ;;  %v1245_v15 = vrot.slane %v1239_v5, 1 }
 0x468   : > { %v1277_v16 = vsel %vm656_vm4, %v1275_v2, %v1276_v11  ;;  %v1279_v17 = vsel %vm656_vm4, %v1276_v11, %v1278_v10  ;;  %v1266_v18 = vsel %vm644_vm2, %v1264_v3, %v1265_v12  ;;  %v1268_v19 = vsel %vm644_vm2, %v1265_v12, %v1267_v6 }
 0x469   : > { %v1291_v20 = vpack.c.bf16 %v1279_v17, %v1277_v16  ;;  %v1939_v21 = vpack.i.bf16 %v1268_v19, %v1266_v18  ;;  %v1255_v22 = vsel %vm632_vm3, %v1253_v8, %v1254_v7  ;;  %v1257_v23 = vsel %vm632_vm3, %v1254_v7, %v1256_v13 }
 0x46a   : > { %v1934_v24 = vpack.i.bf16 %v1257_v23, %v1255_v22  ;;  %v1244_v25 = vsel %vm620_vm1, %v1242_v9, %v1243_v14  ;;  %v1246_v26 = vsel %vm620_vm1, %v1243_v14, %v1245_v15 }
 0x46b   : > { %1777 = vmatmul.msk.bf16.vlgmr.msrb.gmra.mxu3 %vm800_vm13, %v1291_v20  ;;  %1940 = vrot.lane.b32.xlu2 %v1939_v21, %s2603_s18  ;;  %v1929_v27 = vpack.i.bf16 %v1246_v26, %v1244_v25 }
 0x46c   : > { %1935 = vrot.lane.b32.xlu1 %v1934_v24, %s2601_s26 }
 0x46d   : > { %1930 = vrot.lane.b32.xlu0 %v1929_v27, %s2602_s21 }
 0x4c5   : > { %v1941_v37 = vpop.permute.xlu2 %1940 }
 0x4c6   : > { %v1943_v43 = vunpack.i.h.bf16 %v1941_v37  ;;  %v1942_v44 = vunpack.i.l.bf16 %v1941_v37 }
 0x4de   : > { %v1936_v36 = vpop.permute.xlu1 %1935 }
 0x4df   : > { %v1938_v38 = vunpack.i.h.bf16 %v1936_v36  ;;  %v1937_v39 = vunpack.i.l.bf16 %v1936_v36  ;;  %v1931_v40 = vpop.permute.xlu0 %1930 }
 0x4e0   : > { %v1933_v41 = vunpack.i.h.bf16 %v1931_v40  ;;  %v1932_v42 = vunpack.i.l.bf16 %v1931_v40 }
 0x4e2   : > { %v1283_v45 = vsel %vm800_vm13, %v1234_v4, %v1933_v41  ;;  %v1282_v46 = vsel %vm800_vm13, %v1238_v63, %v1932_v42 }
 0x4e3   : > { %v1284_v47 = vsel %vm803_vm14, %v1282_v46, %v1937_v39  ;;  %v1285_v48 = vsel %vm803_vm14, %v1283_v45, %v1938_v38 }
 0x4e4   : > { %v1286_v49 = vsel %vm806_vm15, %v1284_v47, %v1942_v44  ;;  %v1287_v50 = vsel %vm806_vm15, %v1285_v48, %v1943_v43  ;;  %v1501_v43 = vld [vmem:[%s2572_s16] sm:$0x3] }
 0x4e5   : > { %v1290_v51 = vpack.c.bf16 %v1287_v50, %v1286_v49  ;;  %v1504_v47 = vperm.slane %v1501_v43, 1  ;;  %v1503_v50 = vperm.slane %v1501_v43, 0 }
 0x4e7   : > { %1383 = vmatmul.bf16.vlgmr.msrb.gmra.mxu2 %v1290_v51 }
 0x4ee   : > { %v1398_v52 = vpop.f32.mrf.mxu3 }
 0x4f6   : > { %v1400_v59 = vpop.f32.mrf.mxu3 }
 0x56a   : > { %v1384_v54 = vpop.f32.mrf.mxu2 }
 0x56b   : > { %v1399_v55 = vadd.f32 %v1398_v52, %v1384_v54 }
 0x56d   : > { %v1406_v57 = vmul.f32 %v1954_v53, %v1399_v55 }
 0x56f   : > { %v1411_v58 = vadd.f32 %v1955_v56, %v1406_v57 }
 0x571   : > { %v1413_v60 = vmax.f32 %v1411_v58, 0.0 }
 0x572   : > { %v1386_v61 = vpop.f32.mrf.mxu2 }
 0x573   : > { %v1401_v62 = vadd.f32 %v1400_v59, %v1386_v61  ;;  %v1417_v0 = vrot.slane %v1413_v60, 5 }
 0x575   : > { %v1407_v63 = vmul.f32 %v1954_v53, %v1401_v62  ;;  %v1423_v3 = vsel %vm609_vm0, 0.0, %v1417_v0 }
 0x576   : > { %v1467_v9 = vrot.slane %v1423_v3, 5  ;;  %v1427_v6 = vrot.slane %v1423_v3, 1  ;;  %v1438_v18 = vrot.slane %v1423_v3, 2  ;;  %v1449_v25 = vrot.slane %v1423_v3, 3 }
 0x577   : > { %v1412_v1 = vadd.f32 %v1955_v56, %v1407_v63  ;;  %v1478_v26 = vrot.slane %v1423_v3, 6  ;;  %v1460_v44 = vrot.slane %v1423_v3, 4 }
 0x579   : > { %v1414_v2 = vmax.f32 %v1412_v1, 0.0 }
 0x57b   : > { %v1418_v4 = vrot.slane %v1414_v2, 5 }
 0x57d   : > { %v2469_v5 = vsel %vm609_vm0, %v1417_v0, %v1418_v4  ;;  %v2472_v8 = vsel %vm609_vm0, %v1418_v4, 0.0 }
 0x57e   : > { %v1468_v10 = vrot.slane %v2469_v5, 5  ;;  %v1428_v11 = vrot.slane %v2469_v5, 1  ;;  %v1430_v12 = vrot.slane %v2472_v8, 1  ;;  %v1439_v15 = vrot.slane %v2469_v5, 2 }
 0x57f   : > { %v1441_v16 = vrot.slane %v2472_v8, 2  ;;  %v1470_v17 = vrot.slane %v2472_v8, 5  ;;  %v1450_v22 = vrot.slane %v2469_v5, 3  ;;  %v1479_v23 = vrot.slane %v2469_v5, 6 }
 0x580   : > { %v1469_v7 = vsel %vm609_vm0, %v1467_v9, %v1468_v10  ;;  %v1431_v13 = vsel %vm620_vm1, %v1428_v11, %v1430_v12  ;;  %v1429_v14 = vsel %vm620_vm1, %v1427_v6, %v1428_v11  ;;  %v1440_v20 = vsel %vm632_vm3, %v1438_v18, %v1439_v15 }
 0x581   : > { %1472 = vrot.lane.b32.xlu2 %v1469_v7, %s2602_s21  ;;  %1434 = vrot.lane.b32.xlu1 %v1431_v13, %s2602_s21  ;;  %v1442_v19 = vsel %vm632_vm3, %v1439_v15, %v1441_v16  ;;  %v1471_v21 = vsel %vm609_vm0, %v1468_v10, %v1470_v17  ;;  %v1481_v24 = vrot.slane %v2472_v8, 6  ;;  %v1451_v27 = vsel %vm644_vm2, %v1449_v25, %v1450_v22 }
 0x582   : > { %1432 = vrot.lane.b32.xlu0 %v1429_v14, %s2602_s21  ;;  %v1480_v29 = vsel %vm679_vm5, %v1478_v26, %v1479_v23  ;;  %v1452_v30 = vrot.slane %v2472_v8, 3  ;;  %v1461_v41 = vrot.slane %v2469_v5, 4  ;;  %v1463_v46 = vrot.slane %v2472_v8, 4 }
 0x583   : > { %v1482_v28 = vsel %vm679_vm5, %v1479_v23, %v1481_v24  ;;  %vm1542_vm0 = vcmask 130112   ;;  %vm1545_vm1 = vcmask 122880  }
 0x584   : > { %v1453_v31 = vsel %vm644_vm2, %v1450_v22, %v1452_v30  ;;  %v1462_v48 = vsel %vm656_vm4, %v1460_v44, %v1461_v41  ;;  %v1464_v56 = vsel %vm656_vm4, %v1461_v41, %v1463_v46 }
 0x589   : > { %1445 = vrot.lane.b32.xlu2 %v1442_v19, %s2601_s26  ;;  %1443 = vrot.lane.b32.xlu1 %v1440_v20, %s2601_s26 }
 0x58a   : > { %1474 = vrot.lane.b32.xlu0 %v1471_v21, %s2602_s21 }
 0x591   : > { %1454 = vrot.lane.b32.xlu2 %v1451_v27, %s2603_s18  ;;  %1485 = vrot.lane.b32.xlu1 %v1482_v28, %s2601_s26 }
 0x592   : > { %1483 = vrot.lane.b32.xlu0 %v1480_v29, %s2601_s26  ;;  %s1976_s26 = scalar_lea.hbm %s2574_s19, 2 }
 0x593   : > { %p1978_p1 = scmp.lt.s32.totalorder %s1976_s26, %s1972_s17 }
 0x595   : > { %p1979_p2 = por %p1978_p1, %p1977_p0 }
 0x597   : > { %p1980_p3 = pnand %p1979_p2, %p1975_p13 }
 0x599   : > { %1521 = vperm.xlu1 %1944, %v1499_v32  }
 0x59a   : > { %1456 = vrot.lane.b32.xlu0 %v1453_v31, %s2603_s18  ;;  %s597_s18 = sand.u32 1, %s2010_s22  }
 0x59b   : > { %s598_s2 = scalar_lea.vmem [#allocation4], %s597_s18  ;;  %s1548_s6 = scalar_lea.sflag [#allocation5], %s597_s18 }
 0x59c   : > { %s1558_s3 = sshll.u32 %s598_s2, 4  ;;  %s1559_s3 = int_to_ptr.vmem [resolvable:$true] %s1558_s3 }
 0x5a1   : > { %1529 = vperm.xlu1 %1944, %v1500_v34  }
 0x5db   : > { %v1473_v35 = vpop.permute.xlu2 %1472 }
 0x5dc   : > { %v1495_v51 = vsel %vm800_vm13, %v1462_v48, %v1473_v35 }
 0x5e3   : > { %v1446_v38 = vpop.permute.xlu2 %1445 }
 0x5eb   : > { %v1455_v49 = vpop.permute.xlu2 %1454 }
 0x5f3   : > { %v1435_v36 = vpop.permute.xlu1 %1434 }
 0x5f4   : > { %v1433_v37 = vpop.permute.xlu0 %1432  ;;  %v1490_v62 = vsel %vm800_vm13, %v2469_v5, %v1435_v36  ;;  %v1537_v5 = vlaneseq }
 0x5f5   : > { %v1489_v42 = vsel %vm800_vm13, %v1423_v3, %v1433_v37  ;;  %v1492_v1 = vsel %vm803_vm14, %v1490_v62, %v1446_v38 }
 0x5f6   : > { %v1538_v14 = vand.u32 127, %v1537_v5 }
 0x5f8   : > { %v1540_v17 = vadd.s32 4294967288, %v1538_v14 }
 0x5fb   : > { %v1444_v39 = vpop.permute.xlu1 %1443 }
 0x5fc   : > { %v1475_v40 = vpop.permute.xlu0 %1474  ;;  %v1491_v45 = vsel %vm803_vm14, %v1489_v42, %v1444_v39 }
 0x5fd   : > { %v1493_v52 = vsel %vm806_vm15, %v1491_v45, %v1455_v49  ;;  %v1496_v58 = vsel %vm800_vm13, %v1464_v56, %v1475_v40 }
 0x5fe   : > { %v1507_v59 = vmul.f32 %v1503_v50, %v1493_v52 }
 0x603   : > { %v1486_v54 = vpop.permute.xlu1 %1485 }
 0x604   : > { %v1484_v53 = vpop.permute.xlu0 %1483  ;;  %v1498_v60 = vsel %vm803_vm14, %v1496_v58, %v1486_v54 }
 0x605   : > { %v1497_v55 = vsel %vm803_vm14, %v1495_v51, %v1484_v53  ;;  %v1510_v0 = vmul.f32 %v1504_v47, %v1498_v60 }
 0x606   : > { %v1508_v57 = vmul.f32 %v1504_v47, %v1497_v55 }
 0x607   : > { %v1515_v8 = vsel %vm806_vm15, %v1510_v0, 0.0 }
 0x608   : > { %v1511_v61 = vsel %vm806_vm15, %v1508_v57, 0.0 }
 0x609   : > { %v1512_v63 = vadd.f32 %v1511_v61, %v1507_v59 }
 0x60b   : > { %1513 = vadd.xlane.f32.xlu2 %v1512_v63  ;;  %v1522_v10 = vpop.permute.xlu1 %1521 }
 0x60c   : > { %v1457_v2 = vpop.permute.xlu0 %1456  ;;  %v1524_v11 = vperm.slane %v1522_v10, 0 }
 0x60d   : > { %v1494_v3 = vsel %vm806_vm15, %v1492_v1, %v1457_v2 }
 0x60e   : > { %v1509_v4 = vmul.f32 %v1503_v50, %v1494_v3 }
 0x610   : > { %v1516_v9 = vadd.f32 %v1515_v8, %v1509_v4 }
 0x612   : > { %1517 = vadd.xlane.f32.xlu0 %v1516_v9 }
 0x613   : > { %v1530_v12 = vpop.permute.xlu1 %1529 }
 0x614   : > { %v1532_v7 = vperm.slane %v1530_v12, 0 }
 0x67e   : > { %v1514_v6 = vpop.xlane.xlu2 %1513 }
 0x67f   : > { %v1525_v13 = vmul.f32 %v1524_v11, %v1514_v6 }
 0x681   : > { %v1533_v16 = vadd.f32 %v1532_v7, %v1525_v13 }
 0x683   : > { %v1539_v20 = vperm.slane %v1533_v16, %v1538_v14 }
 0x685   : > { %v1518_v15 = vpop.xlane.xlu0 %1517 }
 0x686   : > { %v1526_v18 = vmul.f32 %v1524_v11, %v1518_v15 }
 0x688   : > { %v1534_v19 = vadd.f32 %v1532_v7, %v1526_v18 }
 0x68a   : > { %v1541_v21 = vperm.slane %v1534_v19, %v1540_v17 }
 0x68c   : > { %v1543_v22 = vsel %vm1542_vm0, %v1541_v21, %v1539_v20 }
 0x68d   : > { %1546 = vst.msk [vmem:[%s598_s2] sm:$0x1] %vm1545_vm1, %v1543_v22 }
 0x68e   : > { %1983 = shalt.err (!%p1980_p3)
}
 0x68f   : > { %1819 = dma.vmem_to_hbm [thread:$0]  (%p2175_p5), %s1559_s3, 16, %s1561_s29, %s1548_s6  }
 0x690 PF: > { %p1825_p4 = scmp.ge.s32.totalorder %s2018_s23, 2  ;;  %s1572_s18 = sand.u32 1, %s2006_s1  }
 0x691   : > { %s1573_s4 = scalar_lea.sflag [#allocation5], %s1572_s18 }
 0x692   : > { %p1822_p7 = pnand %p1825_p4, %p2179_p6 }
 0x694   : > { %p1823_p8 = pneg %p1822_p7 }
 0x696   : > { %2001 = dma.done.wait (%p1823_p8), %s1573_s4, 16  }
 0x697   : > { %2003 = vsyncadd (%p1823_p8), %s1573_s4, 4294967280  ;;  %s2604_s5 = sld [smem:[#allocation7_spill]]  ;;  %p33_p9 = scmp.ge.s32.totalorder %s2162_s24, 4  }
 0x698   : > { %s2605_s2 = sld [smem:[#allocation8_spill]]  ;;  %s2606_s1 = smov %s2010_s22 }
 0x699   : > { %s2608_s23 = smov %s2162_s24  ;;  %35 = sbr.rel (!%p33_p9) target bundleno = 11 (0xb), region = 131 }
 0x69d   : > { %s2607_s22 = smov %s2604_s5 }
 0x69e   :  { %1578 = vsyncpa [#allocation5], 1 }
 0x69f   :  { %1580 = vsyncpa [#allocation5 + $0x1], 1 }

</bundles_post_ra>
